<compile_context>
chip_gen: v5e
topology: v5e:2x2
jax: 0.10.0
libtpu: 0.0.40
codegen_flags: <defaults>
</compile_context>

<pallas_src>
import functools

import jax
import jax.numpy as jnp
from jax.experimental import pallas as pl
from jax.experimental.pallas import tpu as pltpu


def lstm_linear_kernel(x_ref, w_ih_ref, w_hh_ref, b_ref, w_lin_ref, b_lin_ref,
                       out_ref, *, B, T, H):
    # x_ref: (T*B, F) time-major flattened input (row block t*B:(t+1)*B == step t).
    # Hoisted input projection for every timestep in one MXU matmul.
    xg = (jnp.dot(x_ref[...], w_ih_ref[...],
                  preferred_element_type=jnp.float32)
          + b_ref[...])                                            # (T*B, 4H)

    h = jnp.zeros((B, H), jnp.float32)
    c = jnp.zeros((B, H), jnp.float32)

    # Small static trip count -> fully unrolled; only h @ W_hh^T + gate
    # nonlinearities are on the serial path.
    for t in range(T):
        gates = xg[t * B:(t + 1) * B, :] + jnp.dot(
            h, w_hh_ref[...], preferred_element_type=jnp.float32)  # (B, 4H)
        i_g = jax.nn.sigmoid(gates[:, 0 * H:1 * H])
        f_g = jax.nn.sigmoid(gates[:, 1 * H:2 * H])
        g_g = jnp.tanh(gates[:, 2 * H:3 * H])
        o_g = jax.nn.sigmoid(gates[:, 3 * H:4 * H])
        c = f_g * c + i_g * g_g
        h = o_g * jnp.tanh(c)

    # Linear head on the last hidden state.
    out_ref[...] = (jnp.dot(h, w_lin_ref[...],
                            preferred_element_type=jnp.float32)
                    + b_lin_ref[...]).astype(out_ref.dtype)


def menopause_predictor_forward(x_btf, w_ih, w_hh, b_ih, b_hh, w_lin, b_lin):
    """x_btf: (B, T, F) float32, like the PyTorch batch_first input."""
    B, T, F = x_btf.shape
    fourH = w_ih.shape[0]
    H = fourH // 4
    O = w_lin.shape[0]

    # Layout plumbing in the wrapper (cheap XLA ops), keeping the kernel 2-D only:
    #   - time-major flatten of x so per-step gate rows are contiguous,
    #   - pre-transposed weights so all in-kernel matmuls are row-major,
    #   - biases combined / reshaped to broadcastable 2-D.
    x_tb = jnp.transpose(x_btf, (1, 0, 2)).reshape(T * B, F)   # (T*B, F)
    w_ih_t = jnp.transpose(w_ih)                               # (F, 4H)
    w_hh_t = jnp.transpose(w_hh)                               # (H, 4H)
    b = (b_ih + b_hh).reshape(1, fourH)                        # (1, 4H)
    w_lin_t = jnp.transpose(w_lin)                             # (H, O)
    b_lin_2d = b_lin.reshape(1, O)                             # (1, O)

    vmem = pltpu.MemorySpace.VMEM
    kernel = functools.partial(lstm_linear_kernel, B=B, T=T, H=H)
    return pl.pallas_call(
        kernel,
        out_shape=jax.ShapeDtypeStruct((B, O), jnp.float32),
        in_specs=[
            pl.BlockSpec(memory_space=vmem),   # x (T*B, F), whole array resident
            pl.BlockSpec(memory_space=vmem),   # W_ih^T
            pl.BlockSpec(memory_space=vmem),   # W_hh^T
            pl.BlockSpec(memory_space=vmem),   # combined LSTM bias
            pl.BlockSpec(memory_space=vmem),   # linear weight^T
            pl.BlockSpec(memory_space=vmem),   # linear bias
        ],
        out_specs=pl.BlockSpec(memory_space=vmem),
    )(x_tb, w_ih_t, w_hh_t, b, w_lin_t, b_lin_2d)


def reference_forward(x_btf, w_ih, w_hh, b_ih, b_hh, w_lin, b_lin):
    """Plain-JAX reference matching torch.nn.LSTM + Linear semantics."""
    B, T, F = x_btf.shape
    H = w_hh.shape[1]
    h = jnp.zeros((B, H), jnp.float32)
    c = jnp.zeros((B, H), jnp.float32)
    for t in range(T):
        x_t = x_btf[:, t, :]
        gates = x_t @ w_ih.T + h @ w_hh.T + b_ih + b_hh
        i = jax.nn.sigmoid(gates[:, 0 * H:1 * H])
        f = jax.nn.sigmoid(gates[:, 1 * H:2 * H])
        g = jnp.tanh(gates[:, 2 * H:3 * H])
        o = jax.nn.sigmoid(gates[:, 3 * H:4 * H])
        c = f * c + i * g
        h = o * jnp.tanh(c)
    return h @ w_lin.T + b_lin


if __name__ == "__main__":
    # Small shapes implied by the module: seq-of-features -> LSTM -> Linear.
    B, T, F, H, O = 2, 8, 16, 32, 4   # batch, seq, input_size, hidden_layer_size, output_size

    key = jax.random.PRNGKey(0)
    ks = jax.random.split(key, 7)
    scale = 0.1
    x = jax.random.normal(ks[0], (B, T, F), jnp.float32)           # batch_first input
    w_ih = scale * jax.random.normal(ks[1], (4 * H, F), jnp.float32)
    w_hh = scale * jax.random.normal(ks[2], (4 * H, H), jnp.float32)
    b_ih = scale * jax.random.normal(ks[3], (4 * H,), jnp.float32)
    b_hh = scale * jax.random.normal(ks[4], (4 * H,), jnp.float32)
    w_lin = scale * jax.random.normal(ks[5], (O, H), jnp.float32)
    b_lin = scale * jax.random.normal(ks[6], (O,), jnp.float32)

    out = menopause_predictor_forward(x, w_ih, w_hh, b_ih, b_hh, w_lin, b_lin)
    out = jax.block_until_ready(out)

    ref = reference_forward(x, w_ih, w_hh, b_ih, b_hh, w_lin, b_lin)
    assert out.shape == (B, O)
    assert jnp.allclose(out, ref, atol=1e-4, rtol=1e-4), (out, ref)

    print("KERNEL_OK")
</pallas_src>

<mosaic_0001>
module attributes {stable_mosaic.version = 11 : i64} {
  func.func @lstm_linear_kernel(%arg0: memref<16x16xf32, #tpu.memory_space<vmem>>, %arg1: memref<16x128xf32, #tpu.memory_space<vmem>>, %arg2: memref<32x128xf32, #tpu.memory_space<vmem>>, %arg3: memref<1x128xf32, #tpu.memory_space<vmem>>, %arg4: memref<32x4xf32, #tpu.memory_space<vmem>>, %arg5: memref<1x4xf32, #tpu.memory_space<vmem>>, %arg6: memref<2x4xf32, #tpu.memory_space<vmem>>) attributes {dimension_semantics = [], scalar_prefetch = 0 : i64, scratch_operands = 0 : i64, tpu.core_type = #tpu.core_type<tc>} {
    %c0 = arith.constant 0 : index
    %c0_0 = arith.constant 0 : index
    %0 = vector.load %arg0[%c0, %c0_0] : memref<16x16xf32, #tpu.memory_space<vmem>>, vector<16x16xf32>
    %c0_1 = arith.constant 0 : index
    %c0_2 = arith.constant 0 : index
    %1 = vector.load %arg1[%c0_1, %c0_2] : memref<16x128xf32, #tpu.memory_space<vmem>>, vector<16x128xf32>
    %cst = arith.constant dense<0.000000e+00> : vector<16x128xf32>
    %2 = tpu.matmul %0, %1, %cst {dimension_numbers = #tpu.dot_dimension_numbers<[1], [0], [0], [1], [0, 0, 1, 1], [], []>} : vector<16x16xf32>, vector<16x128xf32>, vector<16x128xf32> -> vector<16x128xf32>
    %c0_3 = arith.constant 0 : index
    %c0_4 = arith.constant 0 : index
    %3 = vector.load %arg3[%c0_3, %c0_4] : memref<1x128xf32, #tpu.memory_space<vmem>>, vector<1x128xf32>
    %4 = vector.broadcast %3 : vector<1x128xf32> to vector<16x128xf32>
    %5 = arith.addf %2, %4 : vector<16x128xf32>
    %cst_5 = arith.constant 0.000000e+00 : f32
    %6 = vector.broadcast %cst_5 : f32 to vector<2x32xf32>
    %cst_6 = arith.constant 0.000000e+00 : f32
    %7 = vector.broadcast %cst_6 : f32 to vector<2x32xf32>
    %8 = vector.extract_strided_slice %5 {offsets = [0, 0], sizes = [2, 128], strides = [1, 1]} : vector<16x128xf32> to vector<2x128xf32>
    %c0_7 = arith.constant 0 : index
    %c0_8 = arith.constant 0 : index
    %9 = vector.load %arg2[%c0_7, %c0_8] : memref<32x128xf32, #tpu.memory_space<vmem>>, vector<32x128xf32>
    %cst_9 = arith.constant dense<0.000000e+00> : vector<2x128xf32>
    %10 = tpu.matmul %6, %9, %cst_9 {dimension_numbers = #tpu.dot_dimension_numbers<[1], [0], [0], [1], [0, 0, 1, 1], [], []>} : vector<2x32xf32>, vector<32x128xf32>, vector<2x128xf32> -> vector<2x128xf32>
    %11 = arith.addf %8, %10 : vector<2x128xf32>
    %12 = vector.extract_strided_slice %11 {offsets = [0, 0], sizes = [2, 32], strides = [1, 1]} : vector<2x128xf32> to vector<2x32xf32>
    %13 = arith.negf %12 : vector<2x32xf32>
    %14 = math.exp %13 : vector<2x32xf32>
    %cst_10 = arith.constant 1.000000e+00 : f32
    %15 = vector.broadcast %cst_10 : f32 to vector<2x32xf32>
    %16 = arith.addf %15, %14 : vector<2x32xf32>
    %17 = arith.divf %15, %16 : vector<2x32xf32>
    %18 = vector.extract_strided_slice %11 {offsets = [0, 32], sizes = [2, 32], strides = [1, 1]} : vector<2x128xf32> to vector<2x32xf32>
    %19 = arith.negf %18 : vector<2x32xf32>
    %20 = math.exp %19 : vector<2x32xf32>
    %cst_11 = arith.constant 1.000000e+00 : f32
    %21 = vector.broadcast %cst_11 : f32 to vector<2x32xf32>
    %22 = arith.addf %21, %20 : vector<2x32xf32>
    %23 = arith.divf %21, %22 : vector<2x32xf32>
    %24 = vector.extract_strided_slice %11 {offsets = [0, 64], sizes = [2, 32], strides = [1, 1]} : vector<2x128xf32> to vector<2x32xf32>
    %25 = math.tanh %24 : vector<2x32xf32>
    %26 = vector.extract_strided_slice %11 {offsets = [0, 96], sizes = [2, 32], strides = [1, 1]} : vector<2x128xf32> to vector<2x32xf32>
    %27 = arith.negf %26 : vector<2x32xf32>
    %28 = math.exp %27 : vector<2x32xf32>
    %cst_12 = arith.constant 1.000000e+00 : f32
    %29 = vector.broadcast %cst_12 : f32 to vector<2x32xf32>
    %30 = arith.addf %29, %28 : vector<2x32xf32>
    %31 = arith.divf %29, %30 : vector<2x32xf32>
    %32 = arith.mulf %23, %7 : vector<2x32xf32>
    %33 = arith.mulf %17, %25 : vector<2x32xf32>
    %34 = arith.addf %32, %33 : vector<2x32xf32>
    %35 = math.tanh %34 : vector<2x32xf32>
    %36 = arith.mulf %31, %35 : vector<2x32xf32>
    %37 = vector.extract_strided_slice %5 {offsets = [2, 0], sizes = [2, 128], strides = [1, 1]} : vector<16x128xf32> to vector<2x128xf32>
    %c0_13 = arith.constant 0 : index
    %c0_14 = arith.constant 0 : index
    %38 = vector.load %arg2[%c0_13, %c0_14] : memref<32x128xf32, #tpu.memory_space<vmem>>, vector<32x128xf32>
    %cst_15 = arith.constant dense<0.000000e+00> : vector<2x128xf32>
    %39 = tpu.matmul %36, %38, %cst_15 {dimension_numbers = #tpu.dot_dimension_numbers<[1], [0], [0], [1], [0, 0, 1, 1], [], []>} : vector<2x32xf32>, vector<32x128xf32>, vector<2x128xf32> -> vector<2x128xf32>
    %40 = arith.addf %37, %39 : vector<2x128xf32>
    %41 = vector.extract_strided_slice %40 {offsets = [0, 0], sizes = [2, 32], strides = [1, 1]} : vector<2x128xf32> to vector<2x32xf32>
    %42 = arith.negf %41 : vector<2x32xf32>
    %43 = math.exp %42 : vector<2x32xf32>
    %cst_16 = arith.constant 1.000000e+00 : f32
    %44 = vector.broadcast %cst_16 : f32 to vector<2x32xf32>
    %45 = arith.addf %44, %43 : vector<2x32xf32>
    %46 = arith.divf %44, %45 : vector<2x32xf32>
    %47 = vector.extract_strided_slice %40 {offsets = [0, 32], sizes = [2, 32], strides = [1, 1]} : vector<2x128xf32> to vector<2x32xf32>
    %48 = arith.negf %47 : vector<2x32xf32>
    %49 = math.exp %48 : vector<2x32xf32>
    %cst_17 = arith.constant 1.000000e+00 : f32
    %50 = vector.broadcast %cst_17 : f32 to vector<2x32xf32>
    %51 = arith.addf %50, %49 : vector<2x32xf32>
    %52 = arith.divf %50, %51 : vector<2x32xf32>
    %53 = vector.extract_strided_slice %40 {offsets = [0, 64], sizes = [2, 32], strides = [1, 1]} : vector<2x128xf32> to vector<2x32xf32>
    %54 = math.tanh %53 : vector<2x32xf32>
    %55 = vector.extract_strided_slice %40 {offsets = [0, 96], sizes = [2, 32], strides = [1, 1]} : vector<2x128xf32> to vector<2x32xf32>
    %56 = arith.negf %55 : vector<2x32xf32>
    %57 = math.exp %56 : vector<2x32xf32>
    %cst_18 = arith.constant 1.000000e+00 : f32
    %58 = vector.broadcast %cst_18 : f32 to vector<2x32xf32>
    %59 = arith.addf %58, %57 : vector<2x32xf32>
    %60 = arith.divf %58, %59 : vector<2x32xf32>
    %61 = arith.mulf %52, %34 : vector<2x32xf32>
    %62 = arith.mulf %46, %54 : vector<2x32xf32>
    %63 = arith.addf %61, %62 : vector<2x32xf32>
    %64 = math.tanh %63 : vector<2x32xf32>
    %65 = arith.mulf %60, %64 : vector<2x32xf32>
    %66 = vector.extract_strided_slice %5 {offsets = [4, 0], sizes = [2, 128], strides = [1, 1]} : vector<16x128xf32> to vector<2x128xf32>
    %c0_19 = arith.constant 0 : index
    %c0_20 = arith.constant 0 : index
    %67 = vector.load %arg2[%c0_19, %c0_20] : memref<32x128xf32, #tpu.memory_space<vmem>>, vector<32x128xf32>
    %cst_21 = arith.constant dense<0.000000e+00> : vector<2x128xf32>
    %68 = tpu.matmul %65, %67, %cst_21 {dimension_numbers = #tpu.dot_dimension_numbers<[1], [0], [0], [1], [0, 0, 1, 1], [], []>} : vector<2x32xf32>, vector<32x128xf32>, vector<2x128xf32> -> vector<2x128xf32>
    %69 = arith.addf %66, %68 : vector<2x128xf32>
    %70 = vector.extract_strided_slice %69 {offsets = [0, 0], sizes = [2, 32], strides = [1, 1]} : vector<2x128xf32> to vector<2x32xf32>
    %71 = arith.negf %70 : vector<2x32xf32>
    %72 = math.exp %71 : vector<2x32xf32>
    %cst_22 = arith.constant 1.000000e+00 : f32
    %73 = vector.broadcast %cst_22 : f32 to vector<2x32xf32>
    %74 = arith.addf %73, %72 : vector<2x32xf32>
    %75 = arith.divf %73, %74 : vector<2x32xf32>
    %76 = vector.extract_strided_slice %69 {offsets = [0, 32], sizes = [2, 32], strides = [1, 1]} : vector<2x128xf32> to vector<2x32xf32>
    %77 = arith.negf %76 : vector<2x32xf32>
    %78 = math.exp %77 : vector<2x32xf32>
    %cst_23 = arith.constant 1.000000e+00 : f32
    %79 = vector.broadcast %cst_23 : f32 to vector<2x32xf32>
    %80 = arith.addf %79, %78 : vector<2x32xf32>
    %81 = arith.divf %79, %80 : vector<2x32xf32>
    %82 = vector.extract_strided_slice %69 {offsets = [0, 64], sizes = [2, 32], strides = [1, 1]} : vector<2x128xf32> to vector<2x32xf32>
    %83 = math.tanh %82 : vector<2x32xf32>
    %84 = vector.extract_strided_slice %69 {offsets = [0, 96], sizes = [2, 32], strides = [1, 1]} : vector<2x128xf32> to vector<2x32xf32>
    %85 = arith.negf %84 : vector<2x32xf32>
    %86 = math.exp %85 : vector<2x32xf32>
    %cst_24 = arith.constant 1.000000e+00 : f32
    %87 = vector.broadcast %cst_24 : f32 to vector<2x32xf32>
    %88 = arith.addf %87, %86 : vector<2x32xf32>
    %89 = arith.divf %87, %88 : vector<2x32xf32>
    %90 = arith.mulf %81, %63 : vector<2x32xf32>
    %91 = arith.mulf %75, %83 : vector<2x32xf32>
    %92 = arith.addf %90, %91 : vector<2x32xf32>
    %93 = math.tanh %92 : vector<2x32xf32>
    %94 = arith.mulf %89, %93 : vector<2x32xf32>
    %95 = vector.extract_strided_slice %5 {offsets = [6, 0], sizes = [2, 128], strides = [1, 1]} : vector<16x128xf32> to vector<2x128xf32>
    %c0_25 = arith.constant 0 : index
    %c0_26 = arith.constant 0 : index
    %96 = vector.load %arg2[%c0_25, %c0_26] : memref<32x128xf32, #tpu.memory_space<vmem>>, vector<32x128xf32>
    %cst_27 = arith.constant dense<0.000000e+00> : vector<2x128xf32>
    %97 = tpu.matmul %94, %96, %cst_27 {dimension_numbers = #tpu.dot_dimension_numbers<[1], [0], [0], [1], [0, 0, 1, 1], [], []>} : vector<2x32xf32>, vector<32x128xf32>, vector<2x128xf32> -> vector<2x128xf32>
    %98 = arith.addf %95, %97 : vector<2x128xf32>
    %99 = vector.extract_strided_slice %98 {offsets = [0, 0], sizes = [2, 32], strides = [1, 1]} : vector<2x128xf32> to vector<2x32xf32>
    %100 = arith.negf %99 : vector<2x32xf32>
    %101 = math.exp %100 : vector<2x32xf32>
    %cst_28 = arith.constant 1.000000e+00 : f32
    %102 = vector.broadcast %cst_28 : f32 to vector<2x32xf32>
    %103 = arith.addf %102, %101 : vector<2x32xf32>
    %104 = arith.divf %102, %103 : vector<2x32xf32>
    %105 = vector.extract_strided_slice %98 {offsets = [0, 32], sizes = [2, 32], strides = [1, 1]} : vector<2x128xf32> to vector<2x32xf32>
    %106 = arith.negf %105 : vector<2x32xf32>
    %107 = math.exp %106 : vector<2x32xf32>
    %cst_29 = arith.constant 1.000000e+00 : f32
    %108 = vector.broadcast %cst_29 : f32 to vector<2x32xf32>
    %109 = arith.addf %108, %107 : vector<2x32xf32>
    %110 = arith.divf %108, %109 : vector<2x32xf32>
    %111 = vector.extract_strided_slice %98 {offsets = [0, 64], sizes = [2, 32], strides = [1, 1]} : vector<2x128xf32> to vector<2x32xf32>
    %112 = math.tanh %111 : vector<2x32xf32>
    %113 = vector.extract_strided_slice %98 {offsets = [0, 96], sizes = [2, 32], strides = [1, 1]} : vector<2x128xf32> to vector<2x32xf32>
    %114 = arith.negf %113 : vector<2x32xf32>
    %115 = math.exp %114 : vector<2x32xf32>
    %cst_30 = arith.constant 1.000000e+00 : f32
    %116 = vector.broadcast %cst_30 : f32 to vector<2x32xf32>
    %117 = arith.addf %116, %115 : vector<2x32xf32>
    %118 = arith.divf %116, %117 : vector<2x32xf32>
    %119 = arith.mulf %110, %92 : vector<2x32xf32>
    %120 = arith.mulf %104, %112 : vector<2x32xf32>
    %121 = arith.addf %119, %120 : vector<2x32xf32>
    %122 = math.tanh %121 : vector<2x32xf32>
    %123 = arith.mulf %118, %122 : vector<2x32xf32>
    %124 = vector.extract_strided_slice %5 {offsets = [8, 0], sizes = [2, 128], strides = [1, 1]} : vector<16x128xf32> to vector<2x128xf32>
    %c0_31 = arith.constant 0 : index
    %c0_32 = arith.constant 0 : index
    %125 = vector.load %arg2[%c0_31, %c0_32] : memref<32x128xf32, #tpu.memory_space<vmem>>, vector<32x128xf32>
    %cst_33 = arith.constant dense<0.000000e+00> : vector<2x128xf32>
    %126 = tpu.matmul %123, %125, %cst_33 {dimension_numbers = #tpu.dot_dimension_numbers<[1], [0], [0], [1], [0, 0, 1, 1], [], []>} : vector<2x32xf32>, vector<32x128xf32>, vector<2x128xf32> -> vector<2x128xf32>
    %127 = arith.addf %124, %126 : vector<2x128xf32>
    %128 = vector.extract_strided_slice %127 {offsets = [0, 0], sizes = [2, 32], strides = [1, 1]} : vector<2x128xf32> to vector<2x32xf32>
    %129 = arith.negf %128 : vector<2x32xf32>
    %130 = math.exp %129 : vector<2x32xf32>
    %cst_34 = arith.constant 1.000000e+00 : f32
    %131 = vector.broadcast %cst_34 : f32 to vector<2x32xf32>
    %132 = arith.addf %131, %130 : vector<2x32xf32>
    %133 = arith.divf %131, %132 : vector<2x32xf32>
    %134 = vector.extract_strided_slice %127 {offsets = [0, 32], sizes = [2, 32], strides = [1, 1]} : vector<2x128xf32> to vector<2x32xf32>
    %135 = arith.negf %134 : vector<2x32xf32>
    %136 = math.exp %135 : vector<2x32xf32>
    %cst_35 = arith.constant 1.000000e+00 : f32
    %137 = vector.broadcast %cst_35 : f32 to vector<2x32xf32>
    %138 = arith.addf %137, %136 : vector<2x32xf32>
    %139 = arith.divf %137, %138 : vector<2x32xf32>
    %140 = vector.extract_strided_slice %127 {offsets = [0, 64], sizes = [2, 32], strides = [1, 1]} : vector<2x128xf32> to vector<2x32xf32>
    %141 = math.tanh %140 : vector<2x32xf32>
    %142 = vector.extract_strided_slice %127 {offsets = [0, 96], sizes = [2, 32], strides = [1, 1]} : vector<2x128xf32> to vector<2x32xf32>
    %143 = arith.negf %142 : vector<2x32xf32>
    %144 = math.exp %143 : vector<2x32xf32>
    %cst_36 = arith.constant 1.000000e+00 : f32
    %145 = vector.broadcast %cst_36 : f32 to vector<2x32xf32>
    %146 = arith.addf %145, %144 : vector<2x32xf32>
    %147 = arith.divf %145, %146 : vector<2x32xf32>
    %148 = arith.mulf %139, %121 : vector<2x32xf32>
    %149 = arith.mulf %133, %141 : vector<2x32xf32>
    %150 = arith.addf %148, %149 : vector<2x32xf32>
    %151 = math.tanh %150 : vector<2x32xf32>
    %152 = arith.mulf %147, %151 : vector<2x32xf32>
    %153 = vector.extract_strided_slice %5 {offsets = [10, 0], sizes = [2, 128], strides = [1, 1]} : vector<16x128xf32> to vector<2x128xf32>
    %c0_37 = arith.constant 0 : index
    %c0_38 = arith.constant 0 : index
    %154 = vector.load %arg2[%c0_37, %c0_38] : memref<32x128xf32, #tpu.memory_space<vmem>>, vector<32x128xf32>
    %cst_39 = arith.constant dense<0.000000e+00> : vector<2x128xf32>
    %155 = tpu.matmul %152, %154, %cst_39 {dimension_numbers = #tpu.dot_dimension_numbers<[1], [0], [0], [1], [0, 0, 1, 1], [], []>} : vector<2x32xf32>, vector<32x128xf32>, vector<2x128xf32> -> vector<2x128xf32>
    %156 = arith.addf %153, %155 : vector<2x128xf32>
    %157 = vector.extract_strided_slice %156 {offsets = [0, 0], sizes = [2, 32], strides = [1, 1]} : vector<2x128xf32> to vector<2x32xf32>
    %158 = arith.negf %157 : vector<2x32xf32>
    %159 = math.exp %158 : vector<2x32xf32>
    %cst_40 = arith.constant 1.000000e+00 : f32
    %160 = vector.broadcast %cst_40 : f32 to vector<2x32xf32>
    %161 = arith.addf %160, %159 : vector<2x32xf32>
    %162 = arith.divf %160, %161 : vector<2x32xf32>
    %163 = vector.extract_strided_slice %156 {offsets = [0, 32], sizes = [2, 32], strides = [1, 1]} : vector<2x128xf32> to vector<2x32xf32>
    %164 = arith.negf %163 : vector<2x32xf32>
    %165 = math.exp %164 : vector<2x32xf32>
    %cst_41 = arith.constant 1.000000e+00 : f32
    %166 = vector.broadcast %cst_41 : f32 to vector<2x32xf32>
    %167 = arith.addf %166, %165 : vector<2x32xf32>
    %168 = arith.divf %166, %167 : vector<2x32xf32>
    %169 = vector.extract_strided_slice %156 {offsets = [0, 64], sizes = [2, 32], strides = [1, 1]} : vector<2x128xf32> to vector<2x32xf32>
    %170 = math.tanh %169 : vector<2x32xf32>
    %171 = vector.extract_strided_slice %156 {offsets = [0, 96], sizes = [2, 32], strides = [1, 1]} : vector<2x128xf32> to vector<2x32xf32>
    %172 = arith.negf %171 : vector<2x32xf32>
    %173 = math.exp %172 : vector<2x32xf32>
    %cst_42 = arith.constant 1.000000e+00 : f32
    %174 = vector.broadcast %cst_42 : f32 to vector<2x32xf32>
    %175 = arith.addf %174, %173 : vector<2x32xf32>
    %176 = arith.divf %174, %175 : vector<2x32xf32>
    %177 = arith.mulf %168, %150 : vector<2x32xf32>
    %178 = arith.mulf %162, %170 : vector<2x32xf32>
    %179 = arith.addf %177, %178 : vector<2x32xf32>
    %180 = math.tanh %179 : vector<2x32xf32>
    %181 = arith.mulf %176, %180 : vector<2x32xf32>
    %182 = vector.extract_strided_slice %5 {offsets = [12, 0], sizes = [2, 128], strides = [1, 1]} : vector<16x128xf32> to vector<2x128xf32>
    %c0_43 = arith.constant 0 : index
    %c0_44 = arith.constant 0 : index
    %183 = vector.load %arg2[%c0_43, %c0_44] : memref<32x128xf32, #tpu.memory_space<vmem>>, vector<32x128xf32>
    %cst_45 = arith.constant dense<0.000000e+00> : vector<2x128xf32>
    %184 = tpu.matmul %181, %183, %cst_45 {dimension_numbers = #tpu.dot_dimension_numbers<[1], [0], [0], [1], [0, 0, 1, 1], [], []>} : vector<2x32xf32>, vector<32x128xf32>, vector<2x128xf32> -> vector<2x128xf32>
    %185 = arith.addf %182, %184 : vector<2x128xf32>
    %186 = vector.extract_strided_slice %185 {offsets = [0, 0], sizes = [2, 32], strides = [1, 1]} : vector<2x128xf32> to vector<2x32xf32>
    %187 = arith.negf %186 : vector<2x32xf32>
    %188 = math.exp %187 : vector<2x32xf32>
    %cst_46 = arith.constant 1.000000e+00 : f32
    %189 = vector.broadcast %cst_46 : f32 to vector<2x32xf32>
    %190 = arith.addf %189, %188 : vector<2x32xf32>
    %191 = arith.divf %189, %190 : vector<2x32xf32>
    %192 = vector.extract_strided_slice %185 {offsets = [0, 32], sizes = [2, 32], strides = [1, 1]} : vector<2x128xf32> to vector<2x32xf32>
    %193 = arith.negf %192 : vector<2x32xf32>
    %194 = math.exp %193 : vector<2x32xf32>
    %cst_47 = arith.constant 1.000000e+00 : f32
    %195 = vector.broadcast %cst_47 : f32 to vector<2x32xf32>
    %196 = arith.addf %195, %194 : vector<2x32xf32>
    %197 = arith.divf %195, %196 : vector<2x32xf32>
    %198 = vector.extract_strided_slice %185 {offsets = [0, 64], sizes = [2, 32], strides = [1, 1]} : vector<2x128xf32> to vector<2x32xf32>
    %199 = math.tanh %198 : vector<2x32xf32>
    %200 = vector.extract_strided_slice %185 {offsets = [0, 96], sizes = [2, 32], strides = [1, 1]} : vector<2x128xf32> to vector<2x32xf32>
    %201 = arith.negf %200 : vector<2x32xf32>
    %202 = math.exp %201 : vector<2x32xf32>
    %cst_48 = arith.constant 1.000000e+00 : f32
    %203 = vector.broadcast %cst_48 : f32 to vector<2x32xf32>
    %204 = arith.addf %203, %202 : vector<2x32xf32>
    %205 = arith.divf %203, %204 : vector<2x32xf32>
    %206 = arith.mulf %197, %179 : vector<2x32xf32>
    %207 = arith.mulf %191, %199 : vector<2x32xf32>
    %208 = arith.addf %206, %207 : vector<2x32xf32>
    %209 = math.tanh %208 : vector<2x32xf32>
    %210 = arith.mulf %205, %209 : vector<2x32xf32>
    %211 = vector.extract_strided_slice %5 {offsets = [14, 0], sizes = [2, 128], strides = [1, 1]} : vector<16x128xf32> to vector<2x128xf32>
    %c0_49 = arith.constant 0 : index
    %c0_50 = arith.constant 0 : index
    %212 = vector.load %arg2[%c0_49, %c0_50] : memref<32x128xf32, #tpu.memory_space<vmem>>, vector<32x128xf32>
    %cst_51 = arith.constant dense<0.000000e+00> : vector<2x128xf32>
    %213 = tpu.matmul %210, %212, %cst_51 {dimension_numbers = #tpu.dot_dimension_numbers<[1], [0], [0], [1], [0, 0, 1, 1], [], []>} : vector<2x32xf32>, vector<32x128xf32>, vector<2x128xf32> -> vector<2x128xf32>
    %214 = arith.addf %211, %213 : vector<2x128xf32>
    %215 = vector.extract_strided_slice %214 {offsets = [0, 0], sizes = [2, 32], strides = [1, 1]} : vector<2x128xf32> to vector<2x32xf32>
    %216 = arith.negf %215 : vector<2x32xf32>
    %217 = math.exp %216 : vector<2x32xf32>
    %cst_52 = arith.constant 1.000000e+00 : f32
    %218 = vector.broadcast %cst_52 : f32 to vector<2x32xf32>
    %219 = arith.addf %218, %217 : vector<2x32xf32>
    %220 = arith.divf %218, %219 : vector<2x32xf32>
    %221 = vector.extract_strided_slice %214 {offsets = [0, 32], sizes = [2, 32], strides = [1, 1]} : vector<2x128xf32> to vector<2x32xf32>
    %222 = arith.negf %221 : vector<2x32xf32>
    %223 = math.exp %222 : vector<2x32xf32>
    %cst_53 = arith.constant 1.000000e+00 : f32
    %224 = vector.broadcast %cst_53 : f32 to vector<2x32xf32>
    %225 = arith.addf %224, %223 : vector<2x32xf32>
    %226 = arith.divf %224, %225 : vector<2x32xf32>
    %227 = vector.extract_strided_slice %214 {offsets = [0, 64], sizes = [2, 32], strides = [1, 1]} : vector<2x128xf32> to vector<2x32xf32>
    %228 = math.tanh %227 : vector<2x32xf32>
    %229 = vector.extract_strided_slice %214 {offsets = [0, 96], sizes = [2, 32], strides = [1, 1]} : vector<2x128xf32> to vector<2x32xf32>
    %230 = arith.negf %229 : vector<2x32xf32>
    %231 = math.exp %230 : vector<2x32xf32>
    %cst_54 = arith.constant 1.000000e+00 : f32
    %232 = vector.broadcast %cst_54 : f32 to vector<2x32xf32>
    %233 = arith.addf %232, %231 : vector<2x32xf32>
    %234 = arith.divf %232, %233 : vector<2x32xf32>
    %235 = arith.mulf %226, %208 : vector<2x32xf32>
    %236 = arith.mulf %220, %228 : vector<2x32xf32>
    %237 = arith.addf %235, %236 : vector<2x32xf32>
    %238 = math.tanh %237 : vector<2x32xf32>
    %239 = arith.mulf %234, %238 : vector<2x32xf32>
    %c0_55 = arith.constant 0 : index
    %c0_56 = arith.constant 0 : index
    %240 = vector.load %arg4[%c0_55, %c0_56] : memref<32x4xf32, #tpu.memory_space<vmem>>, vector<32x4xf32>
    %cst_57 = arith.constant dense<0.000000e+00> : vector<2x4xf32>
    %241 = tpu.matmul %239, %240, %cst_57 {dimension_numbers = #tpu.dot_dimension_numbers<[1], [0], [0], [1], [0, 0, 1, 1], [], []>} : vector<2x32xf32>, vector<32x4xf32>, vector<2x4xf32> -> vector<2x4xf32>
    %c0_58 = arith.constant 0 : index
    %c0_59 = arith.constant 0 : index
    %242 = vector.load %arg5[%c0_58, %c0_59] : memref<1x4xf32, #tpu.memory_space<vmem>>, vector<1x4xf32>
    %243 = vector.broadcast %242 : vector<1x4xf32> to vector<2x4xf32>
    %244 = arith.addf %241, %243 : vector<2x4xf32>
    %c0_60 = arith.constant 0 : index
    %c0_61 = arith.constant 0 : index
    %245 = vector.load %arg6[%c0_60, %c0_61] : memref<2x4xf32, #tpu.memory_space<vmem>>, vector<2x4xf32>
    tpu.vector_store %arg6[%c0_60, %c0_61], %244 {strides = array<i32>} : memref<2x4xf32, #tpu.memory_space<vmem>>, vector<2x4xf32>,
    return
  }
}

</mosaic_0001>

<bundles_post_ra>
// kernel: tpu_custom_call.1
= control target key start
LH: loop header
LB: loop body
LE: loop exit
PB: predicated region body
PF: predicated region fallthrough
CT: control target
= control target key end

     0   :  { %11 = vsyncpa [#allocation3], 0  ;;  %s1009_s0 = inlined_call_operand.hbm [shape: f32[16,16], index: 0, kind: input, shape index: {}]   ;;  %s1010_s1 = inlined_call_operand.hbm [shape: f32[16,128], index: 1, kind: input, shape index: {}]   ;;  %s1011_s2 = inlined_call_operand.vmem [shape: f32[32,128], index: 2, kind: input, shape index: {}]   ;;  %s1012_s3 = inlined_call_operand.vmem [shape: f32[1,128], index: 3, kind: input, shape index: {}]   ;;  %s1013_s4 = inlined_call_operand.vmem [shape: f32[32,4], index: 4, kind: input, shape index: {}]   ;;  %s1014_s5 = inlined_call_operand.vmem [shape: f32[1,4], index: 5, kind: input, shape index: {}]   ;;  %s1015_s6 = inlined_call_operand.hbm [shape: f32[2,4], index: 6, kind: output, shape index: {}]  }
   0x1   :  { %12 = vsyncpa [#allocation6], 0 }
   0x2   :  { %13 = vsyncpa [#allocation4], 0  ;;  %s18_s23 = sshll.u32 %s1009_s0, 4  ;;  %s869_s24 = smov [#allocation2]   ;;  %s19_s23 = int_to_ptr.hbm [resolvable:$true] %s18_s23 }
   0x3   :  { %s20_s25 = sshll.u32 %s869_s24, 4  ;;  %s31_s28 = sshll.u32 %s1010_s1, 4  ;;  %s21_s25 = int_to_ptr.vmem [resolvable:$true] %s20_s25  ;;  %s32_s28 = int_to_ptr.hbm [resolvable:$true] %s31_s28 }
   0x4   :  { %s870_s29 = smov 128   ;;  %s871_s30 = smov 8  }
   0x5   :  { %26 = dma.hbm_to_vmem [thread:$0]  %s19_s23, 256, %s21_s25, [#allocation3], %s870_s29, %s870_s29, %s871_s30  }
   0x6   :  { %s872_s7 = smov [#allocation5]  }
   0x7   :  { %s33_s8 = sshll.u32 %s872_s7, 4  ;;  %s34_s8 = int_to_ptr.vmem [resolvable:$true] %s33_s8 }
   0x8   :  { %39 = dma.hbm_to_vmem [thread:$0]  %s32_s28, 256, %s34_s8, [#allocation6], %s870_s29, %s870_s29, %s871_s30  }
   0x9   :  { %863 = dma.done.wait [#allocation3], 256  }
   0xa   :  { %864 = vsyncadd [#allocation3], 4294967040 }
   0xb   :  { %865 = dma.done.wait [#allocation6], 256  }
   0xc   :  { %866 = vsyncadd [#allocation6], 4294967040  ;;  %v97_v0 = vld [vmem:[%s1011_s2 + $0x18] sm:$0xff]  ;;  %v96_v2 = vld [vmem:[%s1011_s2 + $0x10] sm:$0xff]  ;;  %vm64_vm0 = vcmask 130048   ;;  %v873_v7 = vmov 0.0  }
   0xd   :  { %v59_v1 = vld [vmem:[#allocation5 + $0x8] sm:$0xff]  ;;  %114 = vmatpush.msra.mxu1 %v97_v0  ;;  %v58_v3 = vld [vmem:[#allocation5] sm:$0xff]  ;;  %v56_v4 = vld [vmem:[#allocation2] sm:$0xff]  ;;  %177 = vmatpush.msra.mxu2 %v97_v0  ;;  %s874_s16 = smov 64   ;;  %vm98_vm5 = vcmask 261120   ;;  %s876_s27 = smov [#allocation7]  }
   0xe   :  { %85 = vmatpush.msra.mxu0 %v59_v1  ;;  %v95_v5 = vld [vmem:[%s1011_s2 + $0x8] sm:$0xff]  ;;  %247 = vmatpush.msra.mxu3 %v97_v0  ;;  %v94_v6 = vld [vmem:[%s1011_s2] sm:$0xff]  ;;  %s686_s28 = sshll.u32 %s876_s27, 4  ;;  %s687_s28 = int_to_ptr.vmem [resolvable:$true] %s686_s28 }
   0xf   :  { %115 = vmatpush.msra.mxu1 %v96_v2  ;;  %178 = vmatpush.msra.mxu2 %v96_v2  ;;  %v934_v8 = vld [vmem:[%s1012_s3] ss:$0 sm:$0xff]  ;;  %s875_s3 = smov 32  }
  0x10   :  { %86 = vmatpush.msra.mxu0 %v58_v3  ;;  %248 = vmatpush.msra.mxu3 %v96_v2 }
  0x11   :  { %699 = vmatmul.msk.f32.vlgmr.msra.gmra.mxu0 %vm64_vm0, %v56_v4  ;;  %116 = vmatpush.msra.mxu1 %v95_v5 }
  0x12   :  { %179 = vmatpush.msra.mxu2 %v95_v5  ;;  %523 = vmatpush.msrb.mxu0 %v97_v0 }
  0x13   :  { %117 = vmatpush.msra.mxu1 %v94_v6  ;;  %249 = vmatpush.msra.mxu3 %v95_v5 }
  0x14   :  { %118 = vmatmul.f32.vlgmr.msra.gmra.mxu1 %v873_v7  ;;  %180 = vmatpush.msra.mxu2 %v94_v6 }
  0x15   :  { %250 = vmatpush.msra.mxu3 %v94_v6  ;;  %317 = vmatpush.msrb.mxu1 %v97_v0 }
  0x16   :  { %387 = vmatpush.msrb.mxu2 %v97_v0  ;;  %524 = vmatpush.msrb.mxu0 %v96_v2 }
  0x17   :  { %453 = vmatpush.msrb.mxu3 %v97_v0  ;;  %318 = vmatpush.msrb.mxu1 %v96_v2 }
  0x18   :  { %388 = vmatpush.msrb.mxu2 %v96_v2  ;;  %525 = vmatpush.msrb.mxu0 %v95_v5 }
  0x19   :  { %454 = vmatpush.msrb.mxu3 %v96_v2  ;;  %319 = vmatpush.msrb.mxu1 %v95_v5 }
  0x1a   :  { %389 = vmatpush.msrb.mxu2 %v95_v5  ;;  %526 = vmatpush.msrb.mxu0 %v94_v6 }
  0x1b   :  { %455 = vmatpush.msrb.mxu3 %v95_v5  ;;  %320 = vmatpush.msrb.mxu1 %v94_v6 }
  0x1c   :  { %390 = vmatpush.msrb.mxu2 %v94_v6 }
  0x1d   :  { %456 = vmatpush.msrb.mxu3 %v94_v6  ;;  %593 = vmatpush.msra.mxu1 %v97_v0 }
  0x1f   :  { %594 = vmatpush.msra.mxu1 %v96_v2 }
  0x21   :  { %595 = vmatpush.msra.mxu1 %v95_v5 }
  0x23   :  { %596 = vmatpush.msra.mxu1 %v94_v6 }
  0x8e   :  { %v88_v9 = vpop.f32.mrf.mxu0 }
  0x8f   :  { %v937_v10 = vadd.f32 %v934_v8, %v88_v9 }
  0x91   :  { %v119_v11 = vpop.f32.mrf.mxu1 }
  0x92   :  { %v122_v12 = vadd.f32 %v119_v11, %v937_v10 }
  0x94   :  { %727 = vtanh.f32 %v122_v12  ;;  %v701_v14 = vmul.f32 -1.442695, %v122_v12 }
  0x96   :  { %729 = vpow2.f32 %v701_v14 }
  0x9a   :  { %v728_v13 = vpop.eup %727 }
  0x9b   :  { %145 = vrot.lane.b32.xlu0 %v728_v13, %s874_s16 }
  0x9c   :  { %v730_v15 = vpop.eup %729 }
  0x9d   :  { %v126_v16 = vadd.f32 1.0, %v730_v15 }
  0x9f   :  { %731 = vrcp.f32 %v126_v16  ;;  %v138_v22 = vand.u32 2147483648, %v126_v16  ;;  %vm132_vm2 = vweird.f32 %v126_v16  ;;  %v136_v23 = vand.u32 2147483647, %v126_v16 }
  0xa1   :  { %v139_v25 = vor.u32 1.1754944e-38, %v138_v22  ;;  %vm137_vm4 = vcmp.eq.f32.partialorder %v136_v23, 8.507059e+37 }
  0xa5   :  { %v732_v17 = vpop.eup %731 }
  0xa6   :  { %v128_v18 = vmul.f32 %v732_v17, %v126_v16  ;;  %vm133_vm1 = vweird.f32 %v732_v17 }
  0xa7   :  { %vm134_vm3 = vmor %vm132_vm2, %vm133_vm1 }
  0xa8   :  { %v129_v19 = vsub.f32 1.0, %v128_v18 }
  0xaa   :  { %v130_v20 = vmul.f32 %v732_v17, %v129_v19 }
  0xac   :  { %v131_v21 = vadd.f32 %v732_v17, %v130_v20 }
  0xae   :  { %v135_v24 = vsel %vm134_vm3, %v732_v17, %v131_v21 }
  0xaf   :  { %v140_v27 = vsel %vm137_vm4, %v139_v25, %v135_v24 }
  0xb0   :  { %v143_v29 = vmul.f32 0.0, %v140_v27 }
 0x10d   :  { %v146_v26 = vpop.permute.xlu0 %145 }
 0x10e   :  { %v148_v28 = vmul.f32 %v146_v26, %v140_v27 }
 0x110   :  { %150 = vrot.lane.b32.xlu0 %v148_v28, %s875_s3 }
 0x182   :  { %v151_v30 = vpop.permute.xlu0 %150 }
 0x183   :  { %v153_v31 = vadd.f32 %v151_v30, %v143_v29 }
 0x185   :  { %733 = vtanh.f32 %v153_v31  ;;  %v210_v55 = vrot.slane %v153_v31, 6 }
 0x18b   :  { %v734_v32 = vpop.eup %733 }
 0x18c   :  { %156 = vrot.lane.b32.xlu1 %v734_v32, %s874_s16 }
 0x1fe   :  { %v157_v33 = vpop.permute.xlu1 %156 }
 0x1ff   :  { %v159_v34 = vmul.f32 %v157_v33, %v140_v27 }
 0x201   :  { %161 = vrot.lane.b32.xlu1 %v159_v34, %s875_s3 }
 0x273   :  { %v162_v35 = vpop.permute.xlu1 %161 }
 0x274   :  { %702 = vmatmul.msk.f32.vlgmr.msra.gmra.mxu2 %vm98_vm5, %v162_v35 }
 0x2f7   :  { %v182_v36 = vpop.f32.mrf.mxu2 }
 0x2f8   :  { %v186_v37 = vrot.slane %v182_v36, 6 }
 0x2fa   :  { %v188_v38 = vadd.f32 %v186_v37, %v937_v10 }
 0x2fc   :  { %735 = vtanh.f32 %v188_v38  ;;  %v703_v40 = vmul.f32 -1.442695, %v188_v38 }
 0x2fe   :  { %737 = vpow2.f32 %v703_v40 }
 0x302   :  { %v736_v39 = vpop.eup %735 }
 0x303   :  { %214 = vrot.lane.b32.xlu2 %v736_v39, %s874_s16 }
 0x304   :  { %v738_v41 = vpop.eup %737 }
 0x305   :  { %v192_v42 = vadd.f32 1.0, %v738_v41 }
 0x307   :  { %739 = vrcp.f32 %v192_v42  ;;  %v204_v48 = vand.u32 2147483648, %v192_v42  ;;  %vm198_vm7 = vweird.f32 %v192_v42  ;;  %v202_v49 = vand.u32 2147483647, %v192_v42 }
 0x309   :  { %v205_v51 = vor.u32 1.1754944e-38, %v204_v48  ;;  %vm203_vm9 = vcmp.eq.f32.partialorder %v202_v49, 8.507059e+37 }
 0x30d   :  { %v740_v43 = vpop.eup %739 }
 0x30e   :  { %v194_v44 = vmul.f32 %v740_v43, %v192_v42  ;;  %vm199_vm6 = vweird.f32 %v740_v43 }
 0x30f   :  { %vm200_vm8 = vmor %vm198_vm7, %vm199_vm6 }
 0x310   :  { %v195_v45 = vsub.f32 1.0, %v194_v44 }
 0x312   :  { %v196_v46 = vmul.f32 %v740_v43, %v195_v45 }
 0x314   :  { %v197_v47 = vadd.f32 %v740_v43, %v196_v46 }
 0x316   :  { %v201_v50 = vsel %vm200_vm8, %v740_v43, %v197_v47 }
 0x317   :  { %v206_v53 = vsel %vm203_vm9, %v205_v51, %v201_v50 }
 0x318   :  { %v212_v56 = vmul.f32 %v210_v55, %v206_v53 }
 0x35d   :  { %v215_v52 = vpop.permute.xlu2 %214 }
 0x35e   :  { %v217_v54 = vmul.f32 %v215_v52, %v206_v53 }
 0x360   :  { %219 = vrot.lane.b32.xlu2 %v217_v54, %s875_s3 }
 0x3ba   :  { %v220_v57 = vpop.permute.xlu2 %219 }
 0x3bb   :  { %v222_v58 = vadd.f32 %v220_v57, %v212_v56  ;;  %v57_v56 = vld [vmem:[#allocation2 + $0x8] sm:$0xff] }
 0x3bc   :  { %700 = vmatmul.msk.f32.gmra.mxu0 %vm64_vm0, %v57_v56 }
 0x3bd   :  { %741 = vtanh.f32 %v222_v58  ;;  %v280_v21 = vrot.slane %v222_v58, 6 }
 0x3c3   :  { %v742_v59 = vpop.eup %741 }
 0x3c4   :  { %225 = vrot.lane.b32.xlu0 %v742_v59, %s874_s16 }
 0x436   :  { %v226_v60 = vpop.permute.xlu0 %225 }
 0x437   :  { %v228_v61 = vmul.f32 %v226_v60, %v206_v53 }
 0x439   :  { %v230_v62 = vrot.slane %v228_v61, 2  ;;  %v91_v58 = vpop.f32.mrf.mxu0 }
 0x43a   :  { %v965_v59 = vadd.f32 %v934_v8, %v91_v58 }
 0x43b   :  { %231 = vrot.lane.b32.xlu1 %v230_v62, %s875_s3 }
 0x4ad   :  { %v232_v63 = vpop.permute.xlu1 %231 }
 0x4ae   :  { %704 = vmatmul.msk.f32.vlgmr.msra.gmra.mxu3 %vm98_vm5, %v232_v63 }
 0x531   :  { %v252_v0 = vpop.f32.mrf.mxu3 }
 0x532   :  { %v256_v1 = vrot.slane %v252_v0, 4 }
 0x534   :  { %v258_v2 = vadd.f32 %v256_v1, %v937_v10 }
 0x536   :  { %743 = vtanh.f32 %v258_v2  ;;  %v705_v4 = vmul.f32 -1.442695, %v258_v2 }
 0x538   :  { %745 = vpow2.f32 %v705_v4 }
 0x53c   :  { %v744_v3 = vpop.eup %743 }
 0x53d   :  { %284 = vrot.lane.b32.xlu2 %v744_v3, %s874_s16 }
 0x53e   :  { %v746_v5 = vpop.eup %745 }
 0x53f   :  { %v262_v6 = vadd.f32 1.0, %v746_v5 }
 0x541   :  { %747 = vrcp.f32 %v262_v6  ;;  %v274_v14 = vand.u32 2147483648, %v262_v6  ;;  %vm268_vm11 = vweird.f32 %v262_v6  ;;  %v272_v15 = vand.u32 2147483647, %v262_v6 }
 0x543   :  { %v275_v17 = vor.u32 1.1754944e-38, %v274_v14  ;;  %vm273_vm13 = vcmp.eq.f32.partialorder %v272_v15, 8.507059e+37 }
 0x547   :  { %v748_v7 = vpop.eup %747 }
 0x548   :  { %v264_v9 = vmul.f32 %v748_v7, %v262_v6  ;;  %vm269_vm10 = vweird.f32 %v748_v7 }
 0x549   :  { %vm270_vm12 = vmor %vm268_vm11, %vm269_vm10 }
 0x54a   :  { %v265_v11 = vsub.f32 1.0, %v264_v9 }
 0x54c   :  { %v266_v12 = vmul.f32 %v748_v7, %v265_v11 }
 0x54e   :  { %v267_v13 = vadd.f32 %v748_v7, %v266_v12 }
 0x550   :  { %v271_v16 = vsel %vm270_vm12, %v748_v7, %v267_v13 }
 0x551   :  { %v276_v19 = vsel %vm273_vm13, %v275_v17, %v271_v16 }
 0x552   :  { %v282_v22 = vmul.f32 %v280_v21, %v276_v19 }
 0x597   :  { %v285_v18 = vpop.permute.xlu2 %284 }
 0x598   :  { %v287_v20 = vmul.f32 %v285_v18, %v276_v19 }
 0x59a   :  { %289 = vrot.lane.b32.xlu0 %v287_v20, %s875_s3 }
 0x60c   :  { %v290_v23 = vpop.permute.xlu0 %289 }
 0x60d   :  { %v292_v24 = vadd.f32 %v290_v23, %v282_v22 }
 0x60f   :  { %749 = vtanh.f32 %v292_v24  ;;  %v350_v48 = vrot.slane %v292_v24, 6 }
 0x615   :  { %v750_v25 = vpop.eup %749 }
 0x616   :  { %295 = vrot.lane.b32.xlu1 %v750_v25, %s874_s16 }
 0x688   :  { %v296_v26 = vpop.permute.xlu1 %295 }
 0x689   :  { %v298_v27 = vmul.f32 %v296_v26, %v276_v19 }
 0x68b   :  { %v300_v28 = vrot.slane %v298_v27, 4 }
 0x68d   :  { %301 = vrot.lane.b32.xlu2 %v300_v28, %s875_s3 }
 0x6e7   :  { %v302_v29 = vpop.permute.xlu2 %301 }
 0x6e8   :  { %706 = vmatmul.msk.f32.vlgmr.msrb.gmra.mxu1 %vm98_vm5, %v302_v29 }
 0x765   :  { %v322_v30 = vpop.f32.mrf.mxu1 }
 0x766   :  { %v326_v31 = vrot.slane %v322_v30, 2 }
 0x768   :  { %v328_v32 = vadd.f32 %v326_v31, %v937_v10 }
 0x76a   :  { %751 = vtanh.f32 %v328_v32  ;;  %v707_v34 = vmul.f32 -1.442695, %v328_v32 }
 0x76c   :  { %753 = vpow2.f32 %v707_v34 }
 0x770   :  { %v752_v33 = vpop.eup %751 }
 0x771   :  { %354 = vrot.lane.b32.xlu0 %v752_v33, %s874_s16 }
 0x772   :  { %v754_v35 = vpop.eup %753 }
 0x773   :  { %v332_v36 = vadd.f32 1.0, %v754_v35 }
 0x775   :  { %755 = vrcp.f32 %v332_v36  ;;  %v344_v42 = vand.u32 2147483648, %v332_v36  ;;  %vm338_vm15 = vweird.f32 %v332_v36  ;;  %v342_v43 = vand.u32 2147483647, %v332_v36 }
 0x777   :  { %v345_v44 = vor.u32 1.1754944e-38, %v344_v42  ;;  %vm343_vm2 = vcmp.eq.f32.partialorder %v342_v43, 8.507059e+37 }
 0x77b   :  { %v756_v37 = vpop.eup %755 }
 0x77c   :  { %v334_v38 = vmul.f32 %v756_v37, %v332_v36  ;;  %vm339_vm14 = vweird.f32 %v756_v37 }
 0x77d   :  { %vm340_vm1 = vmor %vm338_vm15, %vm339_vm14 }
 0x77e   :  { %v335_v39 = vsub.f32 1.0, %v334_v38 }
 0x780   :  { %v336_v40 = vmul.f32 %v756_v37, %v335_v39 }
 0x782   :  { %v337_v41 = vadd.f32 %v756_v37, %v336_v40 }
 0x784   :  { %v341_v10 = vsel %vm340_vm1, %v756_v37, %v337_v41 }
 0x785   :  { %v346_v46 = vsel %vm343_vm2, %v345_v44, %v341_v10 }
 0x786   :  { %v352_v49 = vmul.f32 %v350_v48, %v346_v46 }
 0x7e3   :  { %v355_v45 = vpop.permute.xlu0 %354 }
 0x7e4   :  { %v357_v47 = vmul.f32 %v355_v45, %v346_v46 }
 0x7e6   :  { %359 = vrot.lane.b32.xlu1 %v357_v47, %s875_s3 }
 0x858   :  { %v360_v50 = vpop.permute.xlu1 %359 }
 0x859   :  { %v362_v51 = vadd.f32 %v360_v50, %v352_v49 }
 0x85b   :  { %757 = vtanh.f32 %v362_v51  ;;  %v417_v15 = vrot.slane %v362_v51, 6 }
 0x861   :  { %v758_v52 = vpop.eup %757 }
 0x862   :  { %365 = vrot.lane.b32.xlu2 %v758_v52, %s874_s16 }
 0x8bc   :  { %v366_v53 = vpop.permute.xlu2 %365 }
 0x8bd   :  { %v368_v54 = vmul.f32 %v366_v53, %v346_v46 }
 0x8bf   :  { %v370_v55 = vrot.slane %v368_v54, 6 }
 0x8c1   :  { %371 = vrot.lane.b32.xlu0 %v370_v55, %s875_s3 }
 0x933   :  { %v372_v57 = vpop.permute.xlu0 %371 }
 0x934   :  { %708 = vmatmul.msk.f32.vlgmr.msrb.gmra.mxu2 %vm98_vm5, %v372_v57 }
 0x9b7   :  { %v392_v60 = vpop.f32.mrf.mxu2 }
 0x9b8   :  { %v395_v61 = vadd.f32 %v392_v60, %v965_v59 }
 0x9ba   :  { %759 = vtanh.f32 %v395_v61  ;;  %v709_v63 = vmul.f32 -1.442695, %v395_v61 }
 0x9bc   :  { %761 = vpow2.f32 %v709_v63 }
 0x9c0   :  { %v760_v62 = vpop.eup %759 }
 0x9c1   :  { %421 = vrot.lane.b32.xlu1 %v760_v62, %s874_s16 }
 0x9c2   :  { %v762_v0 = vpop.eup %761 }
 0x9c3   :  { %v399_v1 = vadd.f32 1.0, %v762_v0 }
 0x9c5   :  { %763 = vrcp.f32 %v399_v1  ;;  %v411_v8 = vand.u32 2147483648, %v399_v1  ;;  %vm405_vm3 = vweird.f32 %v399_v1  ;;  %v409_v7 = vand.u32 2147483647, %v399_v1 }
 0x9c7   :  { %v412_v11 = vor.u32 1.1754944e-38, %v411_v8  ;;  %vm410_vm6 = vcmp.eq.f32.partialorder %v409_v7, 8.507059e+37 }
 0x9cb   :  { %v764_v2 = vpop.eup %763 }
 0x9cc   :  { %v401_v3 = vmul.f32 %v764_v2, %v399_v1  ;;  %vm406_vm0 = vweird.f32 %v764_v2 }
 0x9cd   :  { %vm407_vm4 = vmor %vm405_vm3, %vm406_vm0  ;;  %vm679_vm3 = vcmask 25600  }
 0x9ce   :  { %v402_v4 = vsub.f32 1.0, %v401_v3 }
 0x9d0   :  { %v403_v5 = vmul.f32 %v764_v2, %v402_v4 }
 0x9d2   :  { %v404_v6 = vadd.f32 %v764_v2, %v403_v5 }
 0x9d4   :  { %v408_v9 = vsel %vm407_vm4, %v764_v2, %v404_v6 }
 0x9d5   :  { %v413_v13 = vsel %vm410_vm6, %v412_v11, %v408_v9 }
 0x9d6   :  { %v419_v16 = vmul.f32 %v417_v15, %v413_v13 }
 0xa33   :  { %v422_v12 = vpop.permute.xlu1 %421 }
 0xa34   :  { %v424_v14 = vmul.f32 %v422_v12, %v413_v13 }
 0xa36   :  { %426 = vrot.lane.b32.xlu2 %v424_v14, %s875_s3 }
 0xa90   :  { %v427_v17 = vpop.permute.xlu2 %426 }
 0xa91   :  { %v429_v18 = vadd.f32 %v427_v17, %v419_v16 }
 0xa93   :  { %765 = vtanh.f32 %v429_v18  ;;  %v486_v42 = vrot.slane %v429_v18, 6 }
 0xa99   :  { %v766_v19 = vpop.eup %765 }
 0xa9a   :  { %432 = vrot.lane.b32.xlu0 %v766_v19, %s874_s16 }
 0xb0c   :  { %v433_v20 = vpop.permute.xlu0 %432 }
 0xb0d   :  { %v435_v21 = vmul.f32 %v433_v20, %v413_v13 }
 0xb0f   :  { %437 = vrot.lane.b32.xlu1 %v435_v21, %s875_s3 }
 0xb81   :  { %v438_v22 = vpop.permute.xlu1 %437 }
 0xb82   :  { %710 = vmatmul.msk.f32.vlgmr.msrb.gmra.mxu3 %vm98_vm5, %v438_v22 }
 0xc05   :  { %v458_v23 = vpop.f32.mrf.mxu3 }
 0xc06   :  { %v462_v24 = vrot.slane %v458_v23, 6 }
 0xc08   :  { %v464_v25 = vadd.f32 %v462_v24, %v965_v59 }
 0xc0a   :  { %767 = vtanh.f32 %v464_v25  ;;  %v711_v27 = vmul.f32 -1.442695, %v464_v25 }
 0xc0c   :  { %769 = vpow2.f32 %v711_v27 }
 0xc10   :  { %v768_v26 = vpop.eup %767 }
 0xc11   :  { %490 = vrot.lane.b32.xlu2 %v768_v26, %s874_s16 }
 0xc12   :  { %v770_v28 = vpop.eup %769 }
 0xc13   :  { %v468_v29 = vadd.f32 1.0, %v770_v28 }
 0xc15   :  { %771 = vrcp.f32 %v468_v29  ;;  %v480_v35 = vand.u32 2147483648, %v468_v29  ;;  %vm474_vm8 = vweird.f32 %v468_v29  ;;  %v478_v36 = vand.u32 2147483647, %v468_v29 }
 0xc17   :  { %v481_v38 = vor.u32 1.1754944e-38, %v480_v35  ;;  %vm479_vm10 = vcmp.eq.f32.partialorder %v478_v36, 8.507059e+37 }
 0xc1b   :  { %v772_v30 = vpop.eup %771 }
 0xc1c   :  { %v470_v31 = vmul.f32 %v772_v30, %v468_v29  ;;  %vm475_vm7 = vweird.f32 %v772_v30 }
 0xc1d   :  { %vm476_vm9 = vmor %vm474_vm8, %vm475_vm7 }
 0xc1e   :  { %v471_v32 = vsub.f32 1.0, %v470_v31 }
 0xc20   :  { %v472_v33 = vmul.f32 %v772_v30, %v471_v32 }
 0xc22   :  { %v473_v34 = vadd.f32 %v772_v30, %v472_v33 }
 0xc24   :  { %v477_v37 = vsel %vm476_vm9, %v772_v30, %v473_v34 }
 0xc25   :  { %v482_v40 = vsel %vm479_vm10, %v481_v38, %v477_v37 }
 0xc26   :  { %v488_v43 = vmul.f32 %v486_v42, %v482_v40  ;;  %v645_v42 = vld [vmem:[%s1013_s4] sm:$0xff] }
 0xc6b   :  { %v491_v39 = vpop.permute.xlu2 %490 }
 0xc6c   :  { %v493_v41 = vmul.f32 %v491_v39, %v482_v40  ;;  %v648_v39 = vld [vmem:[%s1013_s4 + $0x18] sm:$0xff] }
 0xc6d   :  { %671 = vmatpush.msra.mxu2 %v648_v39 }
 0xc6e   :  { %495 = vrot.lane.b32.xlu0 %v493_v41, %s875_s3  ;;  %v646_v41 = vld [vmem:[%s1013_s4 + $0x8] sm:$0xff] }
 0xce0   :  { %v496_v10 = vpop.permute.xlu0 %495 }
 0xce1   :  { %v498_v44 = vadd.f32 %v496_v10, %v488_v43 }
 0xce3   :  { %773 = vtanh.f32 %v498_v44  ;;  %v556_v6 = vrot.slane %v498_v44, 6 }
 0xce9   :  { %v774_v45 = vpop.eup %773 }
 0xcea   :  { %501 = vrot.lane.b32.xlu1 %v774_v45, %s874_s16 }
 0xd5c   :  { %v502_v46 = vpop.permute.xlu1 %501 }
 0xd5d   :  { %v504_v47 = vmul.f32 %v502_v46, %v482_v40  ;;  %v647_v40 = vld [vmem:[%s1013_s4 + $0x10] sm:$0xff]  ;;  %v726_v46 = vld [vmem:[%s1014_s5] ss:$0 sm:$0xff]  ;;  %s688_s4 = sshll.u32 %s1015_s6, 4  ;;  %s689_s4 = int_to_ptr.hbm [resolvable:$true] %s688_s4 }
 0xd5e   :  { %672 = vmatpush.msra.mxu2 %v647_v40 }
 0xd5f   :  { %v506_v48 = vrot.slane %v504_v47, 2 }
 0xd60   :  { %673 = vmatpush.msra.mxu2 %v646_v41 }
 0xd61   :  { %507 = vrot.lane.b32.xlu2 %v506_v48, %s875_s3 }
 0xd62   :  { %674 = vmatpush.msra.mxu2 %v645_v42 }
 0xdbb   :  { %v508_v49 = vpop.permute.xlu2 %507 }
 0xdbc   :  { %712 = vmatmul.msk.f32.vlgmr.msrb.gmra.mxu0 %vm98_vm5, %v508_v49 }
 0xe39   :  { %v528_v50 = vpop.f32.mrf.mxu0 }
 0xe3a   :  { %v532_v51 = vrot.slane %v528_v50, 4 }
 0xe3c   :  { %v534_v52 = vadd.f32 %v532_v51, %v965_v59 }
 0xe3e   :  { %775 = vtanh.f32 %v534_v52  ;;  %v713_v54 = vmul.f32 -1.442695, %v534_v52 }
 0xe40   :  { %777 = vpow2.f32 %v713_v54 }
 0xe44   :  { %v776_v53 = vpop.eup %775 }
 0xe45   :  { %560 = vrot.lane.b32.xlu0 %v776_v53, %s874_s16 }
 0xe46   :  { %v778_v55 = vpop.eup %777 }
 0xe47   :  { %v538_v56 = vadd.f32 1.0, %v778_v55 }
 0xe49   :  { %779 = vrcp.f32 %v538_v56  ;;  %v550_v63 = vand.u32 2147483648, %v538_v56  ;;  %vm544_vm12 = vweird.f32 %v538_v56  ;;  %v548_v0 = vand.u32 2147483647, %v538_v56 }
 0xe4b   :  { %v551_v2 = vor.u32 1.1754944e-38, %v550_v63  ;;  %vm549_vm14 = vcmp.eq.f32.partialorder %v548_v0, 8.507059e+37 }
 0xe4f   :  { %v780_v57 = vpop.eup %779 }
 0xe50   :  { %v540_v58 = vmul.f32 %v780_v57, %v538_v56  ;;  %vm545_vm11 = vweird.f32 %v780_v57 }
 0xe51   :  { %vm546_vm13 = vmor %vm544_vm12, %vm545_vm11 }
 0xe52   :  { %v541_v60 = vsub.f32 1.0, %v540_v58 }
 0xe54   :  { %v542_v61 = vmul.f32 %v780_v57, %v541_v60 }
 0xe56   :  { %v543_v62 = vadd.f32 %v780_v57, %v542_v61 }
 0xe58   :  { %v547_v1 = vsel %vm546_vm13, %v780_v57, %v543_v62 }
 0xe59   :  { %v552_v4 = vsel %vm549_vm14, %v551_v2, %v547_v1 }
 0xe5a   :  { %v558_v8 = vmul.f32 %v556_v6, %v552_v4 }
 0xeb7   :  { %v561_v3 = vpop.permute.xlu0 %560 }
 0xeb8   :  { %v563_v5 = vmul.f32 %v561_v3, %v552_v4 }
 0xeba   :  { %565 = vrot.lane.b32.xlu1 %v563_v5, %s875_s3 }
 0xf2c   :  { %v566_v7 = vpop.permute.xlu1 %565 }
 0xf2d   :  { %v568_v9 = vadd.f32 %v566_v7, %v558_v8 }
 0xf2f   :  { %781 = vtanh.f32 %v568_v9  ;;  %v626_v34 = vrot.slane %v568_v9, 6 }
 0xf35   :  { %v782_v11 = vpop.eup %781 }
 0xf36   :  { %571 = vrot.lane.b32.xlu2 %v782_v11, %s874_s16 }
 0xf90   :  { %v572_v12 = vpop.permute.xlu2 %571 }
 0xf91   :  { %v574_v13 = vmul.f32 %v572_v12, %v552_v4 }
 0xf93   :  { %v576_v14 = vrot.slane %v574_v13, 4 }
 0xf95   :  { %577 = vrot.lane.b32.xlu0 %v576_v14, %s875_s3 }
0x1007   :  { %v578_v15 = vpop.permute.xlu0 %577 }
0x1008   :  { %714 = vmatmul.msk.f32.vlgmr.msra.gmra.mxu1 %vm98_vm5, %v578_v15 }
0x1085   :  { %v598_v16 = vpop.f32.mrf.mxu1 }
0x1086   :  { %v602_v17 = vrot.slane %v598_v16, 2 }
0x1088   :  { %v604_v18 = vadd.f32 %v602_v17, %v965_v59 }
0x108a   :  { %783 = vtanh.f32 %v604_v18  ;;  %v715_v20 = vmul.f32 -1.442695, %v604_v18 }
0x108c   :  { %785 = vpow2.f32 %v715_v20 }
0x1090   :  { %v784_v19 = vpop.eup %783 }
0x1091   :  { %630 = vrot.lane.b32.xlu1 %v784_v19, %s874_s16 }
0x1092   :  { %v786_v21 = vpop.eup %785 }
0x1093   :  { %v608_v22 = vadd.f32 1.0, %v786_v21 }
0x1095   :  { %787 = vrcp.f32 %v608_v22  ;;  %v620_v28 = vand.u32 2147483648, %v608_v22  ;;  %vm614_vm1 = vweird.f32 %v608_v22  ;;  %v618_v29 = vand.u32 2147483647, %v608_v22 }
0x1097   :  { %v621_v30 = vor.u32 1.1754944e-38, %v620_v28  ;;  %vm619_vm0 = vcmp.eq.f32.partialorder %v618_v29, 8.507059e+37 }
0x109b   :  { %v788_v23 = vpop.eup %787 }
0x109c   :  { %v610_v24 = vmul.f32 %v788_v23, %v608_v22  ;;  %vm615_vm15 = vweird.f32 %v788_v23 }
0x109d   :  { %vm616_vm2 = vmor %vm614_vm1, %vm615_vm15 }
0x109e   :  { %v611_v25 = vsub.f32 1.0, %v610_v24 }
0x10a0   :  { %v612_v26 = vmul.f32 %v788_v23, %v611_v25 }
0x10a2   :  { %v613_v27 = vadd.f32 %v788_v23, %v612_v26 }
0x10a4   :  { %v617_v59 = vsel %vm616_vm2, %v788_v23, %v613_v27 }
0x10a5   :  { %v622_v32 = vsel %vm619_vm0, %v621_v30, %v617_v59 }
0x10a6   :  { %v628_v35 = vmul.f32 %v626_v34, %v622_v32 }
0x1103   :  { %v631_v31 = vpop.permute.xlu1 %630 }
0x1104   :  { %v633_v33 = vmul.f32 %v631_v31, %v622_v32 }
0x1106   :  { %635 = vrot.lane.b32.xlu2 %v633_v33, %s875_s3 }
0x1160   :  { %v636_v36 = vpop.permute.xlu2 %635 }
0x1161   :  { %v638_v37 = vadd.f32 %v636_v36, %v628_v35 }
0x1163   :  { %789 = vtanh.f32 %v638_v37 }
0x1169   :  { %v790_v38 = vpop.eup %789 }
0x116a   :  { %641 = vrot.lane.b32.xlu0 %v790_v38, %s874_s16 }
0x11dc   :  { %v642_v43 = vpop.permute.xlu0 %641 }
0x11dd   :  { %v644_v10 = vmul.f32 %v642_v43, %v622_v32 }
0x11df   :  { %v654_v44 = vrot.slane %v644_v10, 6 }
0x11e1   :  { %655 = vrot.lane.b32.xlu1 %v654_v44, %s875_s3 }
0x1253   :  { %v656_v45 = vpop.permute.xlu1 %655 }
0x1254   :  { %716 = vmatmul.msk.f32.vlgmr.msra.gmra.mxu2 %vm98_vm5, %v656_v45 }
0x12d7   :  { %v676_v47 = vpop.f32.mrf.mxu2 }
0x12d8   :  { %v677_v48 = vadd.f32 %v726_v46, %v676_v47 }
0x12da   :  { %680 = vst.msk [vmem:[#allocation7] sm:$0x3] %vm679_vm3, %v677_v48 }
0x12db   :  { %691 = dma.vmem_to_hbm [thread:$0]  %s687_s28, 32, %s689_s4, [#allocation4]  }
0x12dc   :  { %867 = dma.done.wait [#allocation4], 32  }
0x12dd   :  { %868 = vsyncadd [#allocation4], 4294967264 }
0x12de   :  { %696 = vsyncpa [#allocation3], 1 }
0x12df   :  { %697 = vsyncpa [#allocation6], 1 }
0x12e0   :  { %698 = vsyncpa [#allocation4], 1 }

</bundles_post_ra>
